<compile_context>
chip_gen: v6e
topology: v6e:2x2x1
jax: 0.10.0
libtpu: 0.0.40
codegen_flags: <defaults>
</compile_context>

<pallas_src>
import functools

import jax
import jax.numpy as jnp
from jax.experimental import pallas as pl
from jax.experimental.pallas import tpu as pltpu


def _channel_attention_kernel(x_ref, w1t_ref, w2_ref, out_ref,
                              sum_acc, max_acc, *, hw, hw_tile):
    """One (batch, spatial-tile) grid step.

    x_ref   : (1, C, hw_tile)  activation block; channels on sublanes, spatial on lanes
    w1t_ref : (C, Ch)          fc1 weight, transposed (Ch = C // 16)
    w2_ref  : (C, Ch)          fc2 weight (PyTorch layout, squeezed)
    out_ref : (1, C, 1)        sigmoid(channel-attention logits), column form
    sum_acc : (C, 1) f32 VMEM  running spatial sum
    max_acc : (C, 1) f32 VMEM  running spatial max
    """
    t = pl.program_id(1)
    n_t = pl.num_programs(1)

    @pl.when(t == 0)
    def _init():
        sum_acc[...] = jnp.zeros_like(sum_acc)
        max_acc[...] = jnp.full_like(max_acc, -jnp.inf)

    x = x_ref[0].astype(jnp.float32)                          # (C, hw_tile)

    if hw % hw_tile != 0:
        # Last tile hangs past H*W: mask padded lanes (0 for sum, -inf for max).
        lane = jax.lax.broadcasted_iota(jnp.int32, x.shape, 1)
        valid = (t * hw_tile + lane) < hw
        x_sum = jnp.where(valid, x, 0.0)
        x_max = jnp.where(valid, x, -jnp.inf)
    else:
        x_sum = x
        x_max = x

    # Lane (XLU) reductions; channels stay on sublanes.
    sum_acc[...] = sum_acc[...] + jnp.sum(x_sum, axis=-1, keepdims=True)
    max_acc[...] = jnp.maximum(max_acc[...],
                               jnp.max(x_max, axis=-1, keepdims=True))

    @pl.when(t == n_t - 1)
    def _finalize():
        avg = sum_acc[...] * (1.0 / hw)                       # (C, 1)
        mx = max_acc[...]                                     # (C, 1)
        w1t = w1t_ref[...]                                    # (C, Ch): w1t[c, j] = W1[j, c]
        w2 = w2_ref[...]                                      # (C, Ch): w2[c, j]  = W2[c, j]

        # Shared MLP on the VPU (broadcast-mul + reduce); ReLU is per-branch, so the
        # two branches are kept separate until after fc2, then summed.
        h_avg = jnp.maximum(jnp.sum(w1t * avg, axis=0, keepdims=True), 0.0)   # (1, Ch)
        h_max = jnp.maximum(jnp.sum(w1t * mx, axis=0, keepdims=True), 0.0)    # (1, Ch)
        logits = (jnp.sum(w2 * h_avg, axis=1, keepdims=True) +
                  jnp.sum(w2 * h_max, axis=1, keepdims=True))                 # (C, 1)

        out_ref[0] = jax.nn.sigmoid(logits).astype(out_ref.dtype)


def channel_attention_pallas(x_nchw, w1, w2, *, target_block_bytes=2 * 1024 * 1024):
    """x_nchw: (N, C, H, W); w1: (Ch, C) fc1 weight; w2: (C, Ch) fc2 weight.

    (PyTorch Conv2d 1x1 weights (O, I, 1, 1) are assumed pre-squeezed to (O, I).)
    Returns (N, C, 1, 1), matching the PyTorch module output shape.
    """
    N, C, H, W = x_nchw.shape
    Ch = w1.shape[0]
    HW = H * W

    # Free contiguous reshape — no transpose, no extra HBM pass.
    x = x_nchw.reshape(N, C, HW)
    w1_t = jnp.transpose(w1)                                  # (C, Ch): tiny, one-off

    # Spatial tile: multiple of 128 lanes (or the full dim when HW < 128), sized so the
    # double-buffered input block stays ~4 MiB — comfortably inside v7x's 64 MiB VMEM and
    # v5e's 16 MiB default scoped limit, with enough pipeline steps to hide DMA.
    itemsize = jnp.dtype(x.dtype).itemsize
    if HW <= 128:
        hw_tile = HW
    else:
        max_lanes = max(128, (target_block_bytes // (C * itemsize)) // 128 * 128)
        if HW % 128 == 0:
            hw_tile = min(HW, max_lanes)
        else:
            hw_tile = min((HW // 128) * 128, max_lanes)
    n_hw_tiles = pl.cdiv(HW, hw_tile)

    kernel = functools.partial(_channel_attention_kernel, hw=HW, hw_tile=hw_tile)

    grid_spec = pltpu.PrefetchScalarGridSpec(
        num_scalar_prefetch=0,
        grid=(N, n_hw_tiles),                                 # reduction axis last
        in_specs=[
            pl.BlockSpec((1, C, hw_tile), lambda n, t: (n, 0, t)),
            pl.BlockSpec((C, Ch), lambda n, t: (0, 0)),
            pl.BlockSpec((C, Ch), lambda n, t: (0, 0)),
        ],
        out_specs=pl.BlockSpec((1, C, 1), lambda n, t: (n, 0, 0)),
        scratch_shapes=[
            pltpu.VMEM((C, 1), jnp.float32),                  # running sum
            pltpu.VMEM((C, 1), jnp.float32),                  # running max
        ],
    )

    cost = pl.CostEstimate(
        flops=int(N * (2 * HW * C + 8 * C * Ch)),
        transcendentals=int(2 * N * C),
        bytes_accessed=int(N * C * HW * itemsize + 2 * C * Ch * 4 + N * C * 4),
    )

    out = pl.pallas_call(
        kernel,
        out_shape=jax.ShapeDtypeStruct((N, C, 1), jnp.float32),
        grid_spec=grid_spec,
        compiler_params=pltpu.CompilerParams(
            dimension_semantics=("parallel", "arbitrary")),
        cost_estimate=cost,
    )(x, w1_t, w2)

    return out.reshape(N, C, 1, 1)


def channel_attention_ref(x_nchw, w1, w2):
    """Pure-JAX reference of the PyTorch forward."""
    avg = jnp.mean(x_nchw, axis=(2, 3))                       # (N, C)
    mx = jnp.max(x_nchw, axis=(2, 3))                         # (N, C)

    def mlp(v):
        h = jax.nn.relu(v @ w1.T)                             # fc1 (1x1 conv, no bias)
        return h @ w2.T                                       # fc2 (1x1 conv, no bias)

    return jax.nn.sigmoid(mlp(avg) + mlp(mx))                 # (N, C)


def _check(N, C, H, W, seed, **kwargs):
    kx, k1, k2 = jax.random.split(jax.random.PRNGKey(seed), 3)
    Ch = max(C // 16, 1)
    x = jax.random.normal(kx, (N, C, H, W), jnp.float32)
    w1 = 0.1 * jax.random.normal(k1, (Ch, C), jnp.float32)    # fc1 weight, squeezed
    w2 = 0.1 * jax.random.normal(k2, (C, Ch), jnp.float32)    # fc2 weight, squeezed

    out = channel_attention_pallas(x, w1, w2, **kwargs)
    out = jax.block_until_ready(out)

    ref = channel_attention_ref(x, w1, w2)
    assert out.shape == (N, C, 1, 1)
    err = float(jnp.max(jnp.abs(out.reshape(N, C) - ref)))
    assert jnp.allclose(out.reshape(N, C), ref, atol=1e-5, rtol=1e-5), err


if __name__ == "__main__":
    # Main case: single spatial tile per image (in_planes >= 16 so hidden = C // 16 > 0).
    _check(N=2, C=64, H=16, W=16, seed=0)
    # Multi-tile + masked-tail case: HW = 144 -> two 128-lane tiles, last one masked.
    _check(N=2, C=32, H=12, W=12, seed=1)
    print("KERNEL_OK")
</pallas_src>

<mosaic_0001>
module attributes {stable_mosaic.version = 11 : i64} {
  func.func @_channel_attention_kernel(%arg0: i32, %arg1: i32, %arg2: memref<1x64x256xf32, #tpu.memory_space<vmem>>, %arg3: memref<64x4xf32, #tpu.memory_space<vmem>>, %arg4: memref<64x4xf32, #tpu.memory_space<vmem>>, %arg5: memref<1x64x1xf32, #tpu.memory_space<vmem>>, %arg6: memref<64x1xf32, #tpu.memory_space<vmem>>, %arg7: memref<64x1xf32, #tpu.memory_space<vmem>>) attributes {dimension_semantics = [#tpu.dimension_semantics<parallel>, #tpu.dimension_semantics<arbitrary>], iteration_bounds = array<i64: 2, 1>, scalar_prefetch = 0 : i64, scratch_operands = 2 : i64, tpu.core_type = #tpu.core_type<tc>, window_params = [{transform_indices = @transform_0, window_bounds = array<i64: 1, 64, 256>}, {pipeline_mode = #tpu.pipeline_mode<synchronous>, transform_indices = @transform_1, window_bounds = array<i64: 64, 4>}, {pipeline_mode = #tpu.pipeline_mode<synchronous>, transform_indices = @transform_2, window_bounds = array<i64: 64, 4>}, {transform_indices = @transform_3, window_bounds = array<i64: 1, 64, 1>}]} {
    %c0_i32 = arith.constant 0 : i32
    %0 = arith.cmpi eq, %arg1, %c0_i32 : i32
    %1 = arith.extui %0 : i1 to i32
    %c0_i32_0 = arith.constant 0 : i32
    %2 = arith.cmpi ne, %1, %c0_i32_0 : i32
    scf.if %2 {
      %cst_14 = arith.constant 0.000000e+00 : f32
      %18 = vector.broadcast %cst_14 : f32 to vector<64x1xf32>
      %c0_15 = arith.constant 0 : index
      %c0_16 = arith.constant 0 : index
      %19 = vector.load %arg6[%c0_15, %c0_16] : memref<64x1xf32, #tpu.memory_space<vmem>>, vector<64x1xf32>
      tpu.vector_store %arg6[%c0_15, %c0_16], %18 {strides = array<i32>} : memref<64x1xf32, #tpu.memory_space<vmem>>, vector<64x1xf32>,
      %cst_17 = arith.constant 0xFF800000 : f32
      %20 = vector.broadcast %cst_17 : f32 to vector<64x1xf32>
      %c0_18 = arith.constant 0 : index
      %c0_19 = arith.constant 0 : index
      %21 = vector.load %arg7[%c0_18, %c0_19] : memref<64x1xf32, #tpu.memory_space<vmem>>, vector<64x1xf32>
      tpu.vector_store %arg7[%c0_18, %c0_19], %20 {strides = array<i32>} : memref<64x1xf32, #tpu.memory_space<vmem>>, vector<64x1xf32>,
    } else {
    }
    %c0 = arith.constant 0 : index
    %c0_1 = arith.constant 0 : index
    %c0_2 = arith.constant 0 : index
    %3 = vector.load %arg2[%c0, %c0_1, %c0_2] : memref<1x64x256xf32, #tpu.memory_space<vmem>>, vector<1x64x256xf32>
    %4 = vector.shape_cast %3 : vector<1x64x256xf32> to vector<64x256xf32>
    %c0_3 = arith.constant 0 : index
    %c0_4 = arith.constant 0 : index
    %5 = vector.load %arg6[%c0_3, %c0_4] : memref<64x1xf32, #tpu.memory_space<vmem>>, vector<64x1xf32>
    %cst = arith.constant dense<0.000000e+00> : vector<64xf32>
    %6 = vector.multi_reduction <add>, %4, %cst [1] : vector<64x256xf32> to vector<64xf32>
    %7 = vector.shape_cast %6 : vector<64xf32> to vector<64x1xf32>
    %8 = arith.addf %5, %7 : vector<64x1xf32>
    %c0_5 = arith.constant 0 : index
    %c0_6 = arith.constant 0 : index
    %9 = vector.load %arg6[%c0_5, %c0_6] : memref<64x1xf32, #tpu.memory_space<vmem>>, vector<64x1xf32>
    tpu.vector_store %arg6[%c0_5, %c0_6], %8 {strides = array<i32>} : memref<64x1xf32, #tpu.memory_space<vmem>>, vector<64x1xf32>,
    %c0_7 = arith.constant 0 : index
    %c0_8 = arith.constant 0 : index
    %10 = vector.load %arg7[%c0_7, %c0_8] : memref<64x1xf32, #tpu.memory_space<vmem>>, vector<64x1xf32>
    %cst_9 = arith.constant dense<0xFF800000> : vector<64xf32>
    %11 = vector.multi_reduction <maximumf>, %4, %cst_9 [1] : vector<64x256xf32> to vector<64xf32>
    %12 = vector.shape_cast %11 : vector<64xf32> to vector<64x1xf32>
    %13 = arith.maximumf %10, %12 : vector<64x1xf32>
    %c0_10 = arith.constant 0 : index
    %c0_11 = arith.constant 0 : index
    %14 = vector.load %arg7[%c0_10, %c0_11] : memref<64x1xf32, #tpu.memory_space<vmem>>, vector<64x1xf32>
    tpu.vector_store %arg7[%c0_10, %c0_11], %13 {strides = array<i32>} : memref<64x1xf32, #tpu.memory_space<vmem>>, vector<64x1xf32>,
    %c0_i32_12 = arith.constant 0 : i32
    %15 = arith.cmpi eq, %arg1, %c0_i32_12 : i32
    %16 = arith.extui %15 : i1 to i32
    %c0_i32_13 = arith.constant 0 : i32
    %17 = arith.cmpi ne, %16, %c0_i32_13 : i32
    scf.if %17 {
      %c0_14 = arith.constant 0 : index
      %c0_15 = arith.constant 0 : index
      %18 = vector.load %arg6[%c0_14, %c0_15] : memref<64x1xf32, #tpu.memory_space<vmem>>, vector<64x1xf32>
      %cst_16 = arith.constant 3.906250e-03 : f32
      %19 = vector.broadcast %cst_16 : f32 to vector<64x1xf32>
      %20 = arith.mulf %18, %19 : vector<64x1xf32>
      %c0_17 = arith.constant 0 : index
      %c0_18 = arith.constant 0 : index
      %21 = vector.load %arg7[%c0_17, %c0_18] : memref<64x1xf32, #tpu.memory_space<vmem>>, vector<64x1xf32>
      %c0_19 = arith.constant 0 : index
      %c0_20 = arith.constant 0 : index
      %22 = vector.load %arg3[%c0_19, %c0_20] : memref<64x4xf32, #tpu.memory_space<vmem>>, vector<64x4xf32>
      %c0_21 = arith.constant 0 : index
      %c0_22 = arith.constant 0 : index
      %23 = vector.load %arg4[%c0_21, %c0_22] : memref<64x4xf32, #tpu.memory_space<vmem>>, vector<64x4xf32>
      %24 = vector.broadcast %20 : vector<64x1xf32> to vector<64x4xf32>
      %25 = arith.mulf %22, %24 : vector<64x4xf32>
      %cst_23 = arith.constant dense<0.000000e+00> : vector<4xf32>
      %26 = vector.multi_reduction <add>, %25, %cst_23 [0] : vector<64x4xf32> to vector<4xf32>
      %27 = vector.shape_cast %26 : vector<4xf32> to vector<1x4xf32>
      %cst_24 = arith.constant 0.000000e+00 : f32
      %28 = vector.broadcast %cst_24 : f32 to vector<1x4xf32>
      %29 = arith.maximumf %27, %28 : vector<1x4xf32>
      %30 = vector.broadcast %21 : vector<64x1xf32> to vector<64x4xf32>
      %31 = arith.mulf %22, %30 : vector<64x4xf32>
      %cst_25 = arith.constant dense<0.000000e+00> : vector<4xf32>
      %32 = vector.multi_reduction <add>, %31, %cst_25 [0] : vector<64x4xf32> to vector<4xf32>
      %33 = vector.shape_cast %32 : vector<4xf32> to vector<1x4xf32>
      %cst_26 = arith.constant 0.000000e+00 : f32
      %34 = vector.broadcast %cst_26 : f32 to vector<1x4xf32>
      %35 = arith.maximumf %33, %34 : vector<1x4xf32>
      %36 = vector.broadcast %29 : vector<1x4xf32> to vector<64x4xf32>
      %37 = arith.mulf %23, %36 : vector<64x4xf32>
      %cst_27 = arith.constant dense<0.000000e+00> : vector<64xf32>
      %38 = vector.multi_reduction <add>, %37, %cst_27 [1] : vector<64x4xf32> to vector<64xf32>
      %39 = vector.shape_cast %38 : vector<64xf32> to vector<64x1xf32>
      %40 = vector.broadcast %35 : vector<1x4xf32> to vector<64x4xf32>
      %41 = arith.mulf %23, %40 : vector<64x4xf32>
      %cst_28 = arith.constant dense<0.000000e+00> : vector<64xf32>
      %42 = vector.multi_reduction <add>, %41, %cst_28 [1] : vector<64x4xf32> to vector<64xf32>
      %43 = vector.shape_cast %42 : vector<64xf32> to vector<64x1xf32>
      %44 = arith.addf %39, %43 : vector<64x1xf32>
      %45 = arith.negf %44 : vector<64x1xf32>
      %46 = math.exp %45 : vector<64x1xf32>
      %cst_29 = arith.constant 1.000000e+00 : f32
      %47 = vector.broadcast %cst_29 : f32 to vector<64x1xf32>
      %48 = arith.addf %47, %46 : vector<64x1xf32>
      %49 = arith.divf %47, %48 : vector<64x1xf32>
      %c0_30 = arith.constant 0 : index
      %c0_31 = arith.constant 0 : index
      %c0_32 = arith.constant 0 : index
      %50 = vector.load %arg5[%c0_30, %c0_31, %c0_32] : memref<1x64x1xf32, #tpu.memory_space<vmem>>, vector<1x64x1xf32>
      %51 = vector.shape_cast %50 : vector<1x64x1xf32> to vector<64x1xf32>
      %52 = vector.shape_cast %49 : vector<64x1xf32> to vector<1x64x1xf32>
      tpu.vector_store %arg5[%c0_30, %c0_31, %c0_32], %52 {strides = array<i32>} : memref<1x64x1xf32, #tpu.memory_space<vmem>>, vector<1x64x1xf32>,
    } else {
    }
    return
  }
  func.func @transform_0(%arg0: i32, %arg1: i32) -> (i32, i32, i32) {
    %c0_i32 = arith.constant 0 : i32
    %c0_i32_0 = arith.constant 0 : i32
    return %arg0, %c0_i32, %arg1 : i32, i32, i32
  }
  func.func @transform_1(%arg0: i32, %arg1: i32) -> (i32, i32) {
    %c0_i32 = arith.constant 0 : i32
    %c0_i32_0 = arith.constant 0 : i32
    %c0_i32_1 = arith.constant 0 : i32
    return %c0_i32, %c0_i32_0 : i32, i32
  }
  func.func @transform_2(%arg0: i32, %arg1: i32) -> (i32, i32) {
    %c0_i32 = arith.constant 0 : i32
    %c0_i32_0 = arith.constant 0 : i32
    %c0_i32_1 = arith.constant 0 : i32
    return %c0_i32, %c0_i32_0 : i32, i32
  }
  func.func @transform_3(%arg0: i32, %arg1: i32) -> (i32, i32, i32) {
    %c0_i32 = arith.constant 0 : i32
    %c0_i32_0 = arith.constant 0 : i32
    %c0_i32_1 = arith.constant 0 : i32
    return %arg0, %c0_i32, %c0_i32_0 : i32, i32, i32
  }
}

</mosaic_0001>

<bundles_post_ra>
// kernel: tpu_custom_call.1
= control target key start
LH: loop header
LB: loop body
LE: loop exit
PB: predicated region body
PF: predicated region fallthrough
CT: control target
= control target key end

     0   :  { %8 = vsyncpa [#allocation5], 0  ;;  %s1189_s0 = inlined_call_operand.hbm [shape: f32[2,64,256], index: 0, kind: input, shape index: {}]   ;;  %s1190_s1 = inlined_call_operand.vmem [shape: f32[64,4], index: 1, kind: input, shape index: {}]   ;;  %s1191_s2 = inlined_call_operand.vmem [shape: f32[64,4], index: 2, kind: input, shape index: {}]   ;;  %s1192_s3 = inlined_call_operand.vmem [shape: f32[2,64,1], index: 3, kind: output, shape index: {}]  }
   0x1   :  { %10 = vsyncpa [#allocation5 + $0x1], 0  ;;  %s955_s12 = smov 0   ;;  %s957_s13 = smov 0  }
   0x2   :  { %s959_s14 = smov 0   ;;  %s961_s15 = smov 0  }
   0x3   :  { %s963_s16 = smov 0   ;;  %s965_s17 = smov 0  }
   0x4 LB: > { %s732_s18 = sadd.s32 4294967295, %s927_s17   ;;  %s28_s19 = sadd.s32 1, %s923_s16  ;;  %s927_s17 = sphi %s965_s17, %s16_s17   ;;  %s923_s16 = sphi %s963_s16, %s1200_s16   ;;  %s919_s15 = sphi %s961_s15, %s1199_s15   ;;  %s915_s14 = sphi %s959_s14, %s1198_s14   ;;  %s911_s13 = sphi %s957_s13, %s1197_s13   ;;  %s907_s12 = sphi %s955_s12, %s1196_s12  }
   0x5   : > { %p30_p0 = scmp.ge.s32.totalorder %s28_s19, 2  ;;  %s37_s20 = sadd.s32 1, %s915_s14 }
   0x6   : > { %p44_p1 = scmp.ne.s32.totalorder %s915_s14, %s911_s13  ;;  %p45_p2 = scmp.eq.s32.totalorder %s927_s17, 0 }
   0x7   : > { %s1202_s19 = smov (%p30_p0, %s28_s19), 0  ;;  %p50_p4 = scmp.ne.s32.totalorder %s911_s13, %s907_s12 }
   0x8   : > { %p991_p3 = por %p45_p2, %p44_p1  ;;  %s32_s22 = ssub.s32 %s923_s16, %s1202_s19 }
   0x9   : > { %p51_p5 = scmp.eq.s32.totalorder %s732_s18, 0  ;;  %p35_p6 = scmp.eq.s32.totalorder %s32_s22, 0 }
   0xa   : > { %p761_p8 = scmp.lt.s32.totalorder %s927_s17, 2  ;;  %s148_s25 = sand.u32 1, %s915_s14  }
   0xb   : > { %p998_p7 = por %p51_p5, %p50_p4  ;;  %s753_s26 = sshll.u32 %s923_s16, 11 }
   0xc   : > { %s1004_s24 = scalar_select %p35_p6, %s915_s14, %s37_s20  }
   0xd   : > { %s736_s27 = sshll.u32 %s148_s25, 7  ;;  %s160_s30 = scalar_lea.hbm %s1189_s0, %s753_s26 }
   0xe   : > { %s152_s4 = scalar_lea.vmem [#allocation4], %s736_s27  ;;  %p1013_p9 = pnand %p761_p8, %p991_p3 }
   0xf   : > { %s161_s5 = sshll.u32 %s152_s4, 4  ;;  %s149_s7 = scalar_lea.sflag [#allocation5], %s148_s25  ;;  %s162_s5 = int_to_ptr.vmem [resolvable:$true] %s161_s5 }
  0x10   : > { %p851_p10 = pneg %p1013_p9  ;;  %s862_s8 = scalar_lea.vmem %s162_s5, 2048 }
  0x11   : > { %p863_p11 = scmp.ne.s32.totalorder %s162_s5, %s862_s8  ;;  %s929_s9 = smov [#allocation4]  }
  0x12   : > { %s867_s10 = sshll.u32 %s929_s9, 4  ;;  %s868_s10 = int_to_ptr.vmem [resolvable:$false] %s867_s10 }
  0x13   : > { %p865_p12 = pnand %p863_p11, %p851_p10  ;;  %s869_s11 = scalar_lea.vmem %s868_s10, 4096 }
  0x14   : > { %p870_p0 = scmp.lt.s32.totalorder %s162_s5, %s868_s10  ;;  %p871_p1 = scmp.lt.s32.totalorder %s869_s11, %s862_s8 }
  0x15   : > { %p866_p13 = pneg %p865_p12 }
  0x16   : > { %p872_p2 = por %p871_p1, %p870_p0 }
  0x18   : > { %p873_p3 = pnand %p872_p2, %p866_p13 }
  0x1a   : > { %876 = shalt.err (!%p873_p3)
}
  0x1b   : > { %s930_s12 = smov 256   ;;  %s931_s18 = smov 16  }
  0x1c   : > { %760 = dma.hbm_to_vmem [thread:$0]  (!%p1013_p9), %s160_s30, 2048, %s162_s5, %s149_s7, %s930_s12, %s930_s12, %s931_s18  }
  0x1d   : > { %p739_p4 = scmp.ge.s32.totalorder %s927_s17, 1  ;;  %p169_p5 = scmp.lt.s32.totalorder %s927_s17, 3 }
  0x1f   : > { %p170_p6 = pnand %p739_p4, %p169_p5 }
  0x20   : > { %s175_s20 = sand.u32 (!%p170_p6), 1, %s911_s13  }
  0x21   : > { %173 = sbr.rel (%p170_p6) target bundleno = 577 (0x241), region = 32  ;;  %s740_s21 = sshll.u32 (!%p170_p6), %s175_s20, 7 }
  0x22   : > { %s176_s22 = scalar_lea.sflag (!%p170_p6), [#allocation5], %s175_s20  ;;  %s1024_s25 = scalar_lea.vmem (!%p170_p6), [#allocation4], %s740_s21 }
  0x26   : > { %902 = dma.done.wait (%p998_p7), %s176_s22, 2048  }
  0x27   : > { %904 = vsyncadd (%p998_p7), %s176_s22, 4294965248  ;;  %vm212_vm0 = vcmask 7168   ;;  %v932_v0 = vmov 0.0   ;;  %v233_v1 = vld [vmem:[%s1024_s25 + $0x20] sm:$0xff]  ;;  %v234_v2 = vld [vmem:[%s1024_s25 + $0x28] sm:$0xff]  ;;  %v933_v17 = vmov -inf  }
  0x28   : > { %215 = vst.msk [vmem:[#allocation2 + $0x10] sm:$0xff] %vm212_vm0, %v932_v0  ;;  %213 = vst.msk [vmem:[#allocation2] sm:$0xff] %vm212_vm0, %v932_v0  ;;  %v229_v3 = vld [vmem:[%s1024_s25] sm:$0xff]  ;;  %v259_v4 = vadd.f32 %v234_v2, %v233_v1  ;;  %v230_v5 = vld [vmem:[%s1024_s25 + $0x8] sm:$0xff]  ;;  %v308_v19 = vmax.f32 %v233_v1, %v234_v2  ;;  %v934_v33 = vmov 0   ;;  %vm433_vm1 = vcmask 31744  }
  0x29   : > { %214 = vst.msk [vmem:[#allocation2 + $0x8] sm:$0xff] %vm212_vm0, %v932_v0  ;;  %216 = vst.msk [vmem:[#allocation2 + $0x18] sm:$0xff] %vm212_vm0, %v932_v0  ;;  %v231_v6 = vld [vmem:[%s1024_s25 + $0x10] sm:$0xff]  ;;  %v232_v7 = vld [vmem:[%s1024_s25 + $0x18] sm:$0xff]  ;;  %v253_v8 = vadd.f32 %v230_v5, %v229_v3  ;;  %v302_v9 = vmax.f32 %v229_v3, %v230_v5  ;;  %816 = vset.pattern.permute.xlu0 %v934_v33  ;;  %815 = vset.pattern.permute.xlu1 %v934_v33  ;;  %p203_p7 = scmp.lt.s32.totalorder %s919_s15, 1 }
  0x2a   : > { %217 = vst.msk [vmem:[#allocation2 + $0x20] sm:$0xff] %vm212_vm0, %v932_v0  ;;  %218 = vst.msk [vmem:[#allocation2 + $0x28] sm:$0xff] %vm212_vm0, %v932_v0  ;;  %260 = vadd.xlane.f32.xlu1 %v259_v4  ;;  %v256_v10 = vadd.f32 %v232_v7, %v231_v6  ;;  %v235_v11 = vld [vmem:[%s1024_s25 + $0x30] sm:$0xff]  ;;  %v236_v12 = vld [vmem:[%s1024_s25 + $0x38] sm:$0xff]  ;;  %v305_v14 = vmax.f32 %v231_v6, %v232_v7 }
  0x2b   : > { %219 = vst.msk [vmem:[#allocation2 + $0x30] sm:$0xff] %vm212_vm0, %v932_v0  ;;  %220 = vst.msk [vmem:[#allocation2 + $0x38] sm:$0xff] %vm212_vm0, %v932_v0  ;;  %254 = vadd.xlane.f32.xlu0 %v253_v8  ;;  %v262_v13 = vadd.f32 %v236_v12, %v235_v11  ;;  %v237_v15 = vld [vmem:[%s1024_s25 + $0x40] sm:$0xff]  ;;  %v238_v16 = vld [vmem:[%s1024_s25 + $0x48] sm:$0xff]  ;;  %v311_v23 = vmax.f32 %v235_v11, %v236_v12  ;;  %s1204_s15 = smov (!%p203_p7, %s919_s15), 1 }
  0x2c   : > { %221 = vst.msk [vmem:[#allocation3] sm:$0xff] %vm212_vm0, %v933_v17  ;;  %222 = vst.msk [vmem:[#allocation3 + $0x8] sm:$0xff] %vm212_vm0, %v933_v17  ;;  %v265_v18 = vadd.f32 %v238_v16, %v237_v15  ;;  %v239_v20 = vld [vmem:[%s1024_s25 + $0x50] sm:$0xff]  ;;  %v240_v21 = vld [vmem:[%s1024_s25 + $0x58] sm:$0xff]  ;;  %v314_v27 = vmax.f32 %v237_v15, %v238_v16  ;;  %s754_s10 = sshll.u32 %s1204_s15, 6 }
  0x2d   : > { %223 = vst.msk [vmem:[#allocation3 + $0x10] sm:$0xff] %vm212_vm0, %v933_v17  ;;  %224 = vst.msk [vmem:[#allocation3 + $0x18] sm:$0xff] %vm212_vm0, %v933_v17  ;;  %v268_v22 = vadd.f32 %v240_v21, %v239_v20  ;;  %v241_v24 = vld [vmem:[%s1024_s25 + $0x60] sm:$0xff]  ;;  %v242_v25 = vld [vmem:[%s1024_s25 + $0x68] sm:$0xff]  ;;  %v317_v31 = vmax.f32 %v239_v20, %v240_v21  ;;  %s207_s18 = scalar_lea.vmem %s1192_s3, %s754_s10 }
  0x2e   : > { %303 = vmax.xlane.f32.xlu1 %v302_v9  ;;  %225 = vst.msk [vmem:[#allocation3 + $0x20] sm:$0xff] %vm212_vm0, %v933_v17  ;;  %226 = vst.msk [vmem:[#allocation3 + $0x28] sm:$0xff] %vm212_vm0, %v933_v17  ;;  %v271_v26 = vadd.f32 %v242_v25, %v241_v24  ;;  %v243_v28 = vld [vmem:[%s1024_s25 + $0x70] sm:$0xff]  ;;  %v244_v29 = vld [vmem:[%s1024_s25 + $0x78] sm:$0xff]  ;;  %v320_v34 = vmax.f32 %v241_v24, %v242_v25 }
  0x2f   : > { %257 = vadd.xlane.f32.xlu0 %v256_v10  ;;  %227 = vst.msk [vmem:[#allocation3 + $0x30] sm:$0xff] %vm212_vm0, %v933_v17  ;;  %228 = vst.msk [vmem:[#allocation3 + $0x38] sm:$0xff] %vm212_vm0, %v933_v17  ;;  %v274_v30 = vadd.f32 %v244_v29, %v243_v28  ;;  %v323_v32 = vmax.f32 %v243_v28, %v244_v29  ;;  %v247_v35 = vld [vmem:[#allocation2 + $0x10] sm:$0xff]  ;;  %v245_v36 = vld [vmem:[#allocation2] sm:$0xff] }
  0x30   : > { %v246_v42 = vld [vmem:[#allocation2 + $0x8] sm:$0xff]  ;;  %v248_v47 = vld [vmem:[#allocation2 + $0x18] sm:$0xff] }
  0x31   : > { %v249_v53 = vld [vmem:[#allocation2 + $0x20] sm:$0xff]  ;;  %v250_v60 = vld [vmem:[#allocation2 + $0x28] sm:$0xff] }
  0x32   : > { %263 = vadd.xlane.f32.xlu1 %v262_v13  ;;  %v251_v2 = vld [vmem:[#allocation2 + $0x30] sm:$0xff]  ;;  %v252_v9 = vld [vmem:[#allocation2 + $0x38] sm:$0xff] }
  0x33   : > { %306 = vmax.xlane.f32.xlu0 %v305_v14  ;;  %v294_v41 = vld [vmem:[#allocation3] sm:$0xff]  ;;  %v295_v48 = vld [vmem:[#allocation3 + $0x8] sm:$0xff] }
  0x34   : > { %v296_v54 = vld [vmem:[#allocation3 + $0x10] sm:$0xff]  ;;  %v297_v61 = vld [vmem:[#allocation3 + $0x18] sm:$0xff] }
  0x35   : > { %v298_v4 = vld [vmem:[#allocation3 + $0x20] sm:$0xff]  ;;  %v299_v11 = vld [vmem:[#allocation3 + $0x28] sm:$0xff] }
  0x36   : > { %266 = vadd.xlane.f32.xlu1 %v265_v18  ;;  %v301_v16 = vld [vmem:[#allocation3 + $0x38] sm:$0xff] }
  0x37   : > { %309 = vmax.xlane.f32.xlu0 %v308_v19  ;;  %v300_v19 = vld [vmem:[#allocation3 + $0x30] sm:$0xff] }
  0x3a   : > { %269 = vadd.xlane.f32.xlu1 %v268_v22 }
  0x3b   : > { %312 = vmax.xlane.f32.xlu0 %v311_v23 }
  0x3e   : > { %272 = vadd.xlane.f32.xlu1 %v271_v26 }
  0x3f   : > { %315 = vmax.xlane.f32.xlu0 %v314_v27 }
  0x42   : > { %275 = vadd.xlane.f32.xlu1 %v274_v30 }
  0x43   : > { %318 = vmax.xlane.f32.xlu0 %v317_v31 }
  0x46   : > { %324 = vmax.xlane.f32.xlu1 %v323_v32 }
  0x47   : > { %321 = vmax.xlane.f32.xlu0 %v320_v34 }
  0xb3   : > { %v261_v37 = vpop.xlane.xlu1 %260 }
  0xb4   : > { %v279_v38 = vadd.f32 %v261_v37, %v247_v35  ;;  %v255_v39 = vpop.xlane.xlu0 %254 }
  0xb5   : > { %v277_v40 = vadd.f32 %v255_v39, %v245_v36 }
  0xb6   : > { %288 = vst.msk [vmem:[#allocation2 + $0x10] sm:$0xff] %vm212_vm0, %v279_v38 }
  0xb7   : > { %286 = vst.msk [vmem:[#allocation2] sm:$0xff] %vm212_vm0, %v277_v40  ;;  %v304_v43 = vpop.xlane.xlu1 %303 }
  0xb8   : > { %v326_v44 = vmax.f32 %v294_v41, %v304_v43  ;;  %v258_v45 = vpop.xlane.xlu0 %257 }
  0xb9   : > { %v278_v46 = vadd.f32 %v258_v45, %v246_v42 }
  0xba   : > { %334 = vst.msk [vmem:[#allocation3] sm:$0xff] %vm212_vm0, %v326_v44 }
  0xbb   : > { %287 = vst.msk [vmem:[#allocation2 + $0x8] sm:$0xff] %vm212_vm0, %v278_v46  ;;  %v264_v49 = vpop.xlane.xlu1 %263 }
  0xbc   : > { %v307_v50 = vpop.xlane.xlu0 %306  ;;  %v280_v51 = vadd.f32 %v264_v49, %v248_v47  ;;  %v369_v47 = vld [vmem:[%s1190_s1] sm:$0xff]  ;;  %v371_v49 = vld [vmem:[%s1190_s1 + $0x10] sm:$0xff] }
  0xbd   : > { %v327_v52 = vmax.f32 %v295_v48, %v307_v50  ;;  %v347_v26 = vld [vmem:[#allocation2 + $0x10] sm:$0xff]  ;;  %v370_v48 = vld [vmem:[%s1190_s1 + $0x8] sm:$0xff] }
  0xbe   : > { %289 = vst.msk [vmem:[#allocation2 + $0x18] sm:$0xff] %vm212_vm0, %v280_v51  ;;  %v345_v27 = vld [vmem:[#allocation2] sm:$0xff]  ;;  %v355_v28 = vmul.f32 0.00390625, %v347_v26 }
  0xbf   : > { %335 = vst.msk [vmem:[#allocation3 + $0x8] sm:$0xff] %vm212_vm0, %v327_v52  ;;  %v267_v55 = vpop.xlane.xlu1 %266  ;;  %v353_v29 = vmul.f32 0.00390625, %v345_v27 }
  0xc0   : > { %v310_v56 = vpop.xlane.xlu0 %309  ;;  %v281_v57 = vadd.f32 %v267_v55, %v249_v53 }
  0xc1   : > { %v328_v58 = vmax.f32 %v296_v54, %v310_v56  ;;  %v361_v59 = vld [vmem:[#allocation3] sm:$0xff]  ;;  %v372_v54 = vld [vmem:[%s1190_s1 + $0x18] sm:$0xff] }
  0xc2   : > { %458 = vperm.xlu1 %815, %v361_v59   ;;  %290 = vst.msk [vmem:[#allocation2 + $0x20] sm:$0xff] %vm212_vm0, %v281_v57  ;;  %v346_v18 = vld [vmem:[#allocation2 + $0x8] sm:$0xff]  ;;  %v373_v56 = vld [vmem:[%s1190_s1 + $0x20] sm:$0xff] }
  0xc3   : > { %336 = vst.msk [vmem:[#allocation3 + $0x10] sm:$0xff] %vm212_vm0, %v328_v58  ;;  %v270_v62 = vpop.xlane.xlu1 %269  ;;  %v354_v23 = vmul.f32 0.00390625, %v346_v18 }
  0xc4   : > { %v313_v63 = vpop.xlane.xlu0 %312  ;;  %v282_v0 = vadd.f32 %v270_v62, %v250_v60 }
  0xc5   : > { %v329_v1 = vmax.f32 %v297_v61, %v313_v63  ;;  %v348_v30 = vld [vmem:[#allocation2 + $0x18] sm:$0xff]  ;;  %v374_v63 = vld [vmem:[%s1190_s1 + $0x28] sm:$0xff] }
  0xc6   : > { %v362_v3 = vld [vmem:[#allocation3 + $0x8] sm:$0xff]  ;;  %291 = vst.msk [vmem:[#allocation2 + $0x28] sm:$0xff] %vm212_vm0, %v282_v0  ;;  %v356_v32 = vmul.f32 0.00390625, %v348_v30 }
  0xc7   : > { %337 = vst.msk [vmem:[#allocation3 + $0x18] sm:$0xff] %vm212_vm0, %v329_v1  ;;  %463 = vperm.xlu1 %815, %v362_v3   ;;  %v273_v5 = vpop.xlane.xlu1 %272 }
  0xc8   : > { %v316_v6 = vpop.xlane.xlu0 %315  ;;  %v283_v7 = vadd.f32 %v273_v5, %v251_v2 }
  0xc9   : > { %v330_v8 = vmax.f32 %v298_v4, %v316_v6  ;;  %v349_v33 = vld [vmem:[#allocation2 + $0x20] sm:$0xff] }
  0xca   : > { %v363_v10 = vld [vmem:[#allocation3 + $0x10] sm:$0xff]  ;;  %292 = vst.msk [vmem:[#allocation2 + $0x30] sm:$0xff] %vm212_vm0, %v283_v7  ;;  %v357_v35 = vmul.f32 0.00390625, %v349_v33 }
  0xcb   : > { %338 = vst.msk [vmem:[#allocation3 + $0x20] sm:$0xff] %vm212_vm0, %v330_v8  ;;  %468 = vperm.xlu1 %815, %v363_v10   ;;  %v276_v12 = vpop.xlane.xlu1 %275  ;;  %v375_v10 = vld [vmem:[%s1190_s1 + $0x30] sm:$0xff] }
  0xcc   : > { %v319_v13 = vpop.xlane.xlu0 %318  ;;  %v284_v14 = vadd.f32 %v276_v12, %v252_v9 }
  0xcd   : > { %v331_v15 = vmax.f32 %v299_v11, %v319_v13  ;;  %v350_v36 = vld [vmem:[#allocation2 + $0x28] sm:$0xff] }
  0xce   : > { %v364_v17 = vld [vmem:[#allocation3 + $0x18] sm:$0xff]  ;;  %293 = vst.msk [vmem:[#allocation2 + $0x38] sm:$0xff] %vm212_vm0, %v284_v14  ;;  %v358_v38 = vmul.f32 0.00390625, %v350_v36 }
  0xcf   : > { %473 = vperm.xlu1 %815, %v364_v17   ;;  %339 = vst.msk [vmem:[#allocation3 + $0x28] sm:$0xff] %vm212_vm0, %v331_v15  ;;  %v325_v20 = vpop.xlane.xlu1 %324 }
  0xd0   : > { %v322_v21 = vpop.xlane.xlu0 %321  ;;  %v333_v22 = vmax.f32 %v301_v16, %v325_v20 }
  0xd1   : > { %v332_v24 = vmax.f32 %v300_v19, %v322_v21  ;;  %v351_v39 = vld [vmem:[#allocation2 + $0x30] sm:$0xff] }
  0xd2   : > { %v365_v25 = vld [vmem:[#allocation3 + $0x20] sm:$0xff]  ;;  %341 = vst.msk [vmem:[#allocation3 + $0x38] sm:$0xff] %vm212_vm0, %v333_v22  ;;  %v359_v40 = vmul.f32 0.00390625, %v351_v39  ;;  %v376_v22 = vld [vmem:[%s1190_s1 + $0x38] sm:$0xff] }
  0xd3   : > { %478 = vperm.xlu0 %816, %v365_v25   ;;  %392 = vperm.xlu1 %815, %v354_v23   ;;  %340 = vst.msk [vmem:[#allocation3 + $0x30] sm:$0xff] %vm212_vm0, %v332_v24 }
  0xd5   : > { %v352_v41 = vld [vmem:[#allocation2 + $0x38] sm:$0xff] }
  0xd6   : > { %v366_v31 = vld [vmem:[#allocation3 + $0x28] sm:$0xff]  ;;  %v360_v42 = vmul.f32 0.00390625, %v352_v41 }
  0xd7   : > { %397 = vperm.xlu1 %815, %v355_v28   ;;  %387 = vperm.xlu0 %816, %v353_v29  }
  0xd9   : > { %v368_v37 = vld [vmem:[#allocation3 + $0x38] sm:$0xff] }
  0xda   : > { %v367_v34 = vld [vmem:[#allocation3 + $0x30] sm:$0xff] }
  0xdb   : > { %402 = vperm.xlu1 %815, %v356_v32   ;;  %483 = vperm.xlu0 %816, %v366_v31  }
  0xdf   : > { %407 = vperm.xlu1 %815, %v357_v35   ;;  %488 = vperm.xlu0 %816, %v367_v34  }
  0xe3   : > { %412 = vperm.xlu1 %815, %v358_v38   ;;  %493 = vperm.xlu0 %816, %v368_v37  }
  0xe7   : > { %417 = vperm.xlu1 %815, %v359_v40  }
  0xeb   : > { %422 = vperm.xlu1 %815, %v360_v42  }
 0x13d   : > { %v459_v43 = vpop.permute.xlu1 %458 }
 0x13e   : > { %v496_v52 = vmul.f32 %v459_v43, %v369_v47 }
 0x140   : > { %v504_v59 = vsel %vm433_vm1, %v496_v52, 0.0 }
 0x142   : > { %v464_v44 = vpop.permute.xlu1 %463 }
 0x143   : > { %v497_v53 = vmul.f32 %v464_v44, %v370_v48 }
 0x145   : > { %v505_v60 = vsel %vm433_vm1, %v497_v53, 0.0 }
 0x146   : > { %v469_v45 = vpop.permute.xlu1 %468  ;;  %v506_v3 = vadd.f32 %v505_v60, %v504_v59 }
 0x147   : > { %v498_v55 = vmul.f32 %v469_v45, %v371_v49 }
 0x149   : > { %v507_v0 = vsel %vm433_vm1, %v498_v55, 0.0 }
 0x14a   : > { %v474_v46 = vpop.permute.xlu1 %473  ;;  %v508_v9 = vadd.f32 %v507_v0, %v506_v3 }
 0x14b   : > { %v499_v61 = vmul.f32 %v474_v46, %v372_v54 }
 0x14d   : > { %v509_v6 = vsel %vm433_vm1, %v499_v61, 0.0  ;;  %v380_v61 = vld [vmem:[%s1191_s2 + $0x18] sm:$0xff] }
 0x14e   : > { %v479_v50 = vpop.permute.xlu0 %478  ;;  %v393_v51 = vpop.permute.xlu1 %392  ;;  %v510_v14 = vadd.f32 %v509_v6, %v508_v9 }
 0x14f   : > { %v500_v1 = vmul.f32 %v479_v50, %v373_v56  ;;  %v426_v2 = vmul.f32 %v393_v51, %v370_v48 }
 0x151   : > { %v511_v11 = vsel %vm433_vm1, %v500_v1, 0.0  ;;  %v435_v12 = vsel %vm433_vm1, %v426_v2, 0.0 }
 0x152   : > { %v398_v57 = vpop.permute.xlu1 %397  ;;  %v388_v58 = vpop.permute.xlu0 %387  ;;  %v512_v21 = vadd.f32 %v511_v11, %v510_v14 }
 0x153   : > { %v425_v62 = vmul.f32 %v388_v58, %v369_v47  ;;  %v427_v13 = vmul.f32 %v398_v57, %v371_v49  ;;  %v378_v57 = vld [vmem:[%s1191_s2 + $0x8] sm:$0xff]  ;;  %v377_v58 = vld [vmem:[%s1191_s2] sm:$0xff] }
 0x155   : > { %v434_v7 = vsel %vm433_vm1, %v425_v62, 0.0  ;;  %v437_v23 = vsel %vm433_vm1, %v427_v13, 0.0  ;;  %v379_v62 = vld [vmem:[%s1191_s2 + $0x10] sm:$0xff] }
 0x156   : > { %v403_v4 = vpop.permute.xlu1 %402  ;;  %v484_v5 = vpop.permute.xlu0 %483  ;;  %v436_v15 = vadd.f32 %v435_v12, %v434_v7  ;;  %v382_v7 = vld [vmem:[%s1191_s2 + $0x28] sm:$0xff] }
 0x157   : > { %v501_v8 = vmul.f32 %v484_v5, %v374_v63  ;;  %v428_v18 = vmul.f32 %v403_v4, %v372_v54 }
 0x158   : > { %v438_v26 = vadd.f32 %v437_v23, %v436_v15 }
 0x159   : > { %v513_v19 = vsel %vm433_vm1, %v501_v8, 0.0  ;;  %v439_v30 = vsel %vm433_vm1, %v428_v18, 0.0  ;;  %v381_v8 = vld [vmem:[%s1191_s2 + $0x20] sm:$0xff] }
 0x15a   : > { %v408_v16 = vpop.permute.xlu1 %407  ;;  %v489_v17 = vpop.permute.xlu0 %488  ;;  %v514_v27 = vadd.f32 %v513_v19, %v512_v21  ;;  %v440_v36 = vadd.f32 %v439_v30, %v438_v26 }
 0x15b   : > { %v502_v20 = vmul.f32 %v489_v17, %v375_v10  ;;  %v429_v24 = vmul.f32 %v408_v16, %v373_v56 }
 0x15d   : > { %v515_v25 = vsel %vm433_vm1, %v502_v20, 0.0  ;;  %v441_v34 = vsel %vm433_vm1, %v429_v24, 0.0 }
 0x15e   : > { %v413_v28 = vpop.permute.xlu1 %412  ;;  %v494_v29 = vpop.permute.xlu0 %493  ;;  %v516_v33 = vadd.f32 %v515_v25, %v514_v27  ;;  %v442_v41 = vadd.f32 %v441_v34, %v440_v36  ;;  %v384_v27 = vld [vmem:[%s1191_s2 + $0x38] sm:$0xff] }
 0x15f   : > { %v430_v31 = vmul.f32 %v413_v28, %v374_v63  ;;  %v503_v32 = vmul.f32 %v494_v29, %v376_v22  ;;  %v383_v28 = vld [vmem:[%s1191_s2 + $0x30] sm:$0xff] }
 0x161   : > { %v517_v35 = vsel %vm433_vm1, %v503_v32, 0.0  ;;  %v443_v39 = vsel %vm433_vm1, %v430_v31, 0.0 }
 0x162   : > { %v518_v37 = vadd.f32 %v517_v35, %v516_v33  ;;  %v418_v38 = vpop.permute.xlu1 %417  ;;  %v444_v44 = vadd.f32 %v443_v39, %v442_v41 }
 0x163   : > { %v431_v40 = vmul.f32 %v418_v38, %v375_v10 }
 0x164   : > { %v519_v42 = vrot.slane %v518_v37, 4 }
 0x165   : > { %v445_v43 = vsel %vm433_vm1, %v431_v40, 0.0 }
 0x166   : > { %v520_v45 = vadd.f32 %v519_v42, %v518_v37  ;;  %v423_v46 = vpop.permute.xlu1 %422  ;;  %v446_v49 = vadd.f32 %v445_v43, %v444_v44 }
 0x167   : > { %v432_v47 = vmul.f32 %v423_v46, %v376_v22 }
 0x168   : > { %v521_v48 = vrot.slane %v520_v45, 2 }
 0x169   : > { %v447_v50 = vsel %vm433_vm1, %v432_v47, 0.0 }
 0x16a   : > { %v522_v51 = vadd.f32 %v521_v48, %v520_v45  ;;  %v448_v52 = vadd.f32 %v447_v50, %v446_v49 }
 0x16c   : > { %v523_v53 = vrot.slane %v522_v51, 1  ;;  %v449_v54 = vrot.slane %v448_v52, 4 }
 0x16e   : > { %v524_v55 = vadd.f32 %v523_v53, %v522_v51  ;;  %v450_v56 = vadd.f32 %v449_v54, %v448_v52 }
 0x170   : > { %v525_v59 = vmax.f32 %v524_v55, 0.0  ;;  %v451_v60 = vrot.slane %v450_v56, 2 }
 0x172   : > { %v452_v63 = vadd.f32 %v451_v60, %v450_v56  ;;  %v559_v0 = vmul.f32 %v525_v59, %v378_v57  ;;  %v558_v1 = vmul.f32 %v525_v59, %v377_v58  ;;  %v561_v2 = vmul.f32 %v525_v59, %v380_v61 }
 0x173   : > { %v560_v6 = vmul.f32 %v525_v59, %v379_v62  ;;  %v563_v10 = vmul.f32 %v525_v59, %v382_v7  ;;  %v562_v14 = vmul.f32 %v525_v59, %v381_v8  ;;  %v565_v35 = vmul.f32 %v525_v59, %v384_v27 }
 0x174   : > { %v453_v3 = vrot.slane %v452_v63, 1  ;;  %v569_v4 = vsel %vm433_vm1, %v559_v0, 0.0  ;;  %v566_v5 = vsel %vm433_vm1, %v558_v1, 0.0  ;;  %v575_v12 = vsel %vm433_vm1, %v561_v2, 0.0 }
 0x175   : > { %570 = vadd.xlane.f32.xlu1 %v569_v4  ;;  %567 = vadd.xlane.f32.xlu0 %v566_v5  ;;  %v572_v13 = vsel %vm433_vm1, %v560_v6, 0.0  ;;  %v581_v15 = vsel %vm433_vm1, %v563_v10, 0.0  ;;  %v578_v16 = vsel %vm433_vm1, %v562_v14, 0.0  ;;  %v564_v36 = vmul.f32 %v525_v59, %v383_v28 }
 0x176   : > { %v454_v9 = vadd.f32 %v453_v3, %v452_v63  ;;  %v587_v37 = vsel %vm433_vm1, %v565_v35, 0.0 }
 0x177   : > { %v584_v38 = vsel %vm433_vm1, %v564_v36, 0.0 }
 0x178   : > { %v455_v11 = vmax.f32 %v454_v9, 0.0 }
 0x179   : > { %576 = vadd.xlane.f32.xlu1 %v575_v12  ;;  %573 = vadd.xlane.f32.xlu0 %v572_v13 }
 0x17a   : > { %v526_v17 = vmul.f32 %v455_v11, %v377_v58  ;;  %v527_v18 = vmul.f32 %v455_v11, %v378_v57  ;;  %v529_v21 = vmul.f32 %v455_v11, %v380_v61  ;;  %v528_v22 = vmul.f32 %v455_v11, %v379_v62 }
 0x17b   : > { %v531_v25 = vmul.f32 %v455_v11, %v382_v7  ;;  %v530_v26 = vmul.f32 %v455_v11, %v381_v8  ;;  %v533_v31 = vmul.f32 %v455_v11, %v384_v27  ;;  %v532_v32 = vmul.f32 %v455_v11, %v383_v28 }
 0x17c   : > { %v534_v19 = vsel %vm433_vm1, %v526_v17, 0.0  ;;  %v537_v20 = vsel %vm433_vm1, %v527_v18, 0.0  ;;  %v543_v23 = vsel %vm433_vm1, %v529_v21, 0.0  ;;  %v540_v24 = vsel %vm433_vm1, %v528_v22, 0.0 }
 0x17d   : > { %582 = vadd.xlane.f32.xlu1 %v581_v15  ;;  %579 = vadd.xlane.f32.xlu0 %v578_v16  ;;  %v549_v29 = vsel %vm433_vm1, %v531_v25, 0.0  ;;  %v546_v30 = vsel %vm433_vm1, %v530_v26, 0.0  ;;  %v555_v33 = vsel %vm433_vm1, %v533_v31, 0.0  ;;  %v552_v34 = vsel %vm433_vm1, %v532_v32, 0.0 }
 0x181   : > { %535 = vadd.xlane.f32.xlu1 %v534_v19  ;;  %538 = vadd.xlane.f32.xlu0 %v537_v20 }
 0x185   : > { %544 = vadd.xlane.f32.xlu1 %v543_v23  ;;  %541 = vadd.xlane.f32.xlu0 %v540_v24 }
 0x189   : > { %550 = vadd.xlane.f32.xlu1 %v549_v29  ;;  %547 = vadd.xlane.f32.xlu0 %v546_v30 }
 0x18d   : > { %556 = vadd.xlane.f32.xlu1 %v555_v33  ;;  %553 = vadd.xlane.f32.xlu0 %v552_v34 }
 0x191   : > { %588 = vadd.xlane.f32.xlu1 %v587_v37  ;;  %585 = vadd.xlane.f32.xlu0 %v584_v38 }
 0x1fe   : > { %v571_v39 = vpop.xlane.xlu1 %570  ;;  %v568_v40 = vpop.xlane.xlu0 %567 }
 0x202   : > { %v577_v41 = vpop.xlane.xlu1 %576  ;;  %v574_v42 = vpop.xlane.xlu0 %573 }
 0x206   : > { %v583_v43 = vpop.xlane.xlu1 %582  ;;  %v580_v44 = vpop.xlane.xlu0 %579 }
 0x20a   : > { %v536_v45 = vpop.xlane.xlu1 %535  ;;  %v539_v46 = vpop.xlane.xlu0 %538 }
 0x20b   : > { %v590_v47 = vadd.f32 %v568_v40, %v536_v45  ;;  %v591_v48 = vadd.f32 %v571_v39, %v539_v46 }
 0x20d   : > { %v743_v49 = vmul.f32 -1.442695, %v590_v47  ;;  %v744_v50 = vmul.f32 -1.442695, %v591_v48 }
 0x20e   : > { %v545_v51 = vpop.xlane.xlu1 %544  ;;  %v542_v52 = vpop.xlane.xlu0 %541 }
 0x20f   : > { %817 = vpow2.f32 %v743_v49  ;;  %v593_v53 = vadd.f32 %v577_v41, %v545_v51  ;;  %v592_v54 = vadd.f32 %v574_v42, %v542_v52 }
 0x210   : > { %819 = vpow2.f32 %v744_v50 }
 0x211   : > { %v746_v55 = vmul.f32 -1.442695, %v593_v53  ;;  %v745_v56 = vmul.f32 -1.442695, %v592_v54 }
 0x212   : > { %v551_v57 = vpop.xlane.xlu1 %550  ;;  %v548_v58 = vpop.xlane.xlu0 %547 }
 0x213   : > { %821 = vpow2.f32 %v746_v55  ;;  %v595_v59 = vadd.f32 %v583_v43, %v551_v57  ;;  %v594_v60 = vadd.f32 %v580_v44, %v548_v58 }
 0x214   : > { %823 = vpow2.f32 %v745_v56 }
 0x215   : > { %v748_v61 = vmul.f32 -1.442695, %v595_v59  ;;  %v747_v62 = vmul.f32 -1.442695, %v594_v60 }
 0x216   : > { %v557_v63 = vpop.xlane.xlu1 %556  ;;  %v554_v0 = vpop.xlane.xlu0 %553 }
 0x217   : > { %825 = vpow2.f32 %v748_v61 }
 0x218   : > { %827 = vpow2.f32 %v747_v62 }
 0x21a   : > { %v589_v1 = vpop.xlane.xlu1 %588  ;;  %v586_v2 = vpop.xlane.xlu0 %585 }
 0x21b   : > { %v597_v3 = vadd.f32 %v589_v1, %v557_v63  ;;  %v596_v4 = vadd.f32 %v586_v2, %v554_v0 }
 0x21c   : > { %v818_v5 = vpop.eup %817 }
 0x21d   : > { %v820_v6 = vpop.eup %819  ;;  %v622_v7 = vadd.f32 1.0, %v818_v5  ;;  %v750_v8 = vmul.f32 -1.442695, %v597_v3  ;;  %v749_v10 = vmul.f32 -1.442695, %v596_v4 }
 0x21e   : > { %v623_v9 = vadd.f32 1.0, %v820_v6 }
 0x21f   : > { %829 = vrcp.f32 %v622_v7 }
 0x220   : > { %v822_v11 = vpop.eup %821  ;;  %831 = vrcp.f32 %v623_v9 }
 0x221   : > { %v824_v12 = vpop.eup %823  ;;  %v625_v13 = vadd.f32 1.0, %v822_v11  ;;  %833 = vpow2.f32 %v750_v8 }
 0x222   : > { %v624_v14 = vadd.f32 1.0, %v824_v12  ;;  %835 = vpow2.f32 %v749_v10 }
 0x223   : > { %837 = vrcp.f32 %v625_v13 }
 0x224   : > { %v826_v15 = vpop.eup %825  ;;  %839 = vrcp.f32 %v624_v14 }
 0x225   : > { %v828_v16 = vpop.eup %827  ;;  %v627_v17 = vadd.f32 1.0, %v826_v15 }
 0x226   : > { %v626_v18 = vadd.f32 1.0, %v828_v16 }
 0x227   : > { %841 = vrcp.f32 %v627_v17 }
 0x228   : > { %843 = vrcp.f32 %v626_v18 }
 0x22c   : > { %v830_v19 = vpop.eup %829 }
 0x22d   : > { %v832_v20 = vpop.eup %831  ;;  %646 = vst.msk [vmem:[%s207_s18] sm:$0xff] %vm212_vm0, %v830_v19 }
 0x22e   : > { %v834_v21 = vpop.eup %833  ;;  %647 = vst.msk [vmem:[%s207_s18 + $0x8] sm:$0xff] %vm212_vm0, %v832_v20 }
 0x22f   : > { %v836_v22 = vpop.eup %835  ;;  %v629_v23 = vadd.f32 1.0, %v834_v21 }
 0x230   : > { %v838_v24 = vpop.eup %837  ;;  %v628_v25 = vadd.f32 1.0, %v836_v22 }
 0x231   : > { %v840_v26 = vpop.eup %839  ;;  %649 = vst.msk [vmem:[%s207_s18 + $0x18] sm:$0xff] %vm212_vm0, %v838_v24  ;;  %845 = vrcp.f32 %v629_v23 }
 0x232   : > { %648 = vst.msk [vmem:[%s207_s18 + $0x10] sm:$0xff] %vm212_vm0, %v840_v26  ;;  %847 = vrcp.f32 %v628_v25 }
 0x234   : > { %v842_v27 = vpop.eup %841 }
 0x235   : > { %v844_v28 = vpop.eup %843  ;;  %651 = vst.msk [vmem:[%s207_s18 + $0x28] sm:$0xff] %vm212_vm0, %v842_v27 }
 0x236   : > { %650 = vst.msk [vmem:[%s207_s18 + $0x20] sm:$0xff] %vm212_vm0, %v844_v28 }
 0x23e   : > { %v846_v29 = vpop.eup %845 }
 0x23f   : > { %v848_v30 = vpop.eup %847  ;;  %653 = vst.msk [vmem:[%s207_s18 + $0x38] sm:$0xff] %vm212_vm0, %v846_v29 }
 0x240   : > { %652 = vst.msk [vmem:[%s207_s18 + $0x30] sm:$0xff] %vm212_vm0, %v848_v30 }
 0x241 PF: > { %s16_s17 = sadd.s32 1, %s927_s17   ;;  %s1196_s12 = smov %s911_s13 }
 0x242   : > { %p13_p8 = scmp.ge.s32.totalorder %s16_s17, 4   ;;  %s1197_s13 = smov %s915_s14 }
 0x243   : > { %s1198_s14 = smov %s1004_s24  ;;  %s1199_s15 = smov %s923_s16 }
 0x244   : > { %s1200_s16 = smov %s1202_s19  ;;  %15 = sbr.rel (!%p13_p8) target bundleno = 4 (0x4), region = 80 }
 0x249   :  { %675 = vsyncpa [#allocation5], 1 }
 0x24a   :  { %677 = vsyncpa [#allocation5 + $0x1], 1 }

</bundles_post_ra>
